<compile_context>
chip_gen: v7x
topology: tpu7x:2x2x1
jax: 0.10.0
libtpu: 0.0.40
codegen_flags: <defaults>
</compile_context>

<pallas_src>
import jax
import jax.numpy as jnp
from jax.experimental import pallas as pl
from jax.experimental.pallas import tpu as pltpu

KERNEL_SIZE = 5
STRIDE = 16
OUT_CHANNELS = 16
LANE = 128
PATCH_PAD = 32            # per-patch feature padding (25 -> 32 for Cin=1)
MAX_BATCH_TILE = 512      # rows per grid step for large batches


def _round_up(x: int, m: int) -> int:
    return ((x + m - 1) // m) * m


def _fused_kernel(patches_ref, convw_ref, convb_ref, linw_ref, linb_ref, out_ref):
    """One batch tile: conv (block-diag matmul) + bias + ReLU + Linear + Sigmoid.

    patches: (tn, Ktot) bf16      convw: (Ktot, P*Cout) bf16 (block-diagonal)
    convb:   (1, P*Cout) f32      linw:  (1, P*Cout) f32
    linb:    (1,) f32 in SMEM     out:   (1, tn) f32
    """
    # Conv2d over all P output positions as ONE MXU matmul; the result is
    # already the per-sample flattened feature row (tn, P*Cout): no reshape,
    # no relayout. bf16 operands, f32 accumulation.
    flat = jnp.dot(patches_ref[...], convw_ref[...],
                   preferred_element_type=jnp.float32)          # (tn, P*Cout)
    flat = jnp.maximum(flat + convb_ref[...], 0.0)               # bias + ReLU (f32)

    # Linear head: contract on the last (lane) dim of both operands -> (1, tn)
    # lane-dense logit row, no activation transpose.
    logit = jax.lax.dot_general(
        linw_ref[...], flat,
        dimension_numbers=(((1,), (1,)), ((), ())),
        preferred_element_type=jnp.float32)                      # (1, tn)
    out_ref[...] = jax.nn.sigmoid(logit + linb_ref[0])


def _im2col(x, k, s):
    """x: (N, Cin, H, W) -> (N, P, Cin*k*k); P = OH*OW row-major, features
    ordered (cin, kh, kw) to match Conv2d weight flattening. Fully vectorized."""
    n, cin, h, w = x.shape
    oh = (h - k) // s + 1
    ow = (w - k) // s + 1
    row_idx = (jnp.arange(oh) * s)[:, None] + jnp.arange(k)[None, :]   # (OH, k)
    col_idx = (jnp.arange(ow) * s)[:, None] + jnp.arange(k)[None, :]   # (OW, k)
    patches = x[:, :, row_idx, :]                  # (N, Cin, OH, k, W)
    patches = patches[:, :, :, :, col_idx]         # (N, Cin, OH, k, OW, k)
    patches = patches.transpose(0, 2, 4, 1, 3, 5)  # (N, OH, OW, Cin, kh, kw)
    return patches.reshape(n, oh * ow, cin * k * k), oh, ow


@jax.jit
def sample_model_forward(x, conv_w, conv_b, lin_w, lin_b):
    """x: (N, Cin, H, W) float32 NCHW. Returns (N, 1) float32 (eval mode)."""
    n = x.shape[0]
    cout = conv_w.shape[0]
    patches, oh, ow = _im2col(x, KERNEL_SIZE, STRIDE)            # (N, P, kfeat)
    p = oh * ow
    kfeat = patches.shape[-1]

    kpad = _round_up(kfeat, PATCH_PAD)     # per-patch padded feature width
    ktot = p * kpad                        # total contraction width (128 here)
    feat = p * cout                        # flattened feature count

    # Batch tile: full 128-lane output block for small batches; up to 512 rows
    # per step for large batches (fewer grid steps, still tiny VMEM blocks).
    if n <= LANE:
        tn = LANE
    else:
        tn = min(MAX_BATCH_TILE, _round_up(n, LANE))
    n_pad = _round_up(n, tn)
    grid = (n_pad // tn,)

    # Patches -> one row per sample (N_pad, Ktot); each patch padded 25 -> 32.
    patches = jnp.pad(patches, ((0, n_pad - n), (0, 0), (0, kpad - kfeat)))
    patches = patches.reshape(n_pad, ktot).astype(jnp.bfloat16)

    # Block-diagonal conv weight (Ktot, P*Cout): block p maps patch p's padded
    # features to output columns p*Cout .. (p+1)*Cout.
    w_pad = jnp.pad(conv_w.reshape(cout, kfeat).T, ((0, kpad - kfeat), (0, 0)))
    convw_bd = jnp.kron(jnp.eye(p, dtype=w_pad.dtype), w_pad).astype(jnp.bfloat16)

    # Conv bias broadcast to (1, P*Cout) in p*Cout+c order.
    convb_full = jnp.tile(conv_b, p).reshape(1, feat).astype(jnp.float32)

    # Linear weight (1, Cout*P) indexed c*P+p  ->  (1, P*Cout) indexed p*Cout+c,
    # matching the kernel's feature-column order (== PyTorch NCHW flatten).
    linw_flat = lin_w.reshape(cout, p).T.reshape(1, feat).astype(jnp.float32)
    linb1 = lin_b.reshape(1).astype(jnp.float32)

    out_row = pl.pallas_call(
        _fused_kernel,
        out_shape=jax.ShapeDtypeStruct((1, n_pad), jnp.float32),
        grid=grid,
        in_specs=[
            pl.BlockSpec((tn, ktot), lambda i: (i, 0)),          # patches (bf16)
            pl.BlockSpec((ktot, feat), lambda i: (0, 0)),        # block-diag conv W
            pl.BlockSpec((1, feat), lambda i: (0, 0)),           # conv bias (f32)
            pl.BlockSpec((1, feat), lambda i: (0, 0)),           # linear weight (f32)
            pl.BlockSpec(memory_space=pltpu.MemorySpace.SMEM),   # linear bias scalar
        ],
        out_specs=pl.BlockSpec((1, tn), lambda i: (0, i)),       # lane-dense logits
        compiler_params=pltpu.CompilerParams(
            dimension_semantics=("parallel",)),
    )(patches, convw_bd, convb_full, linw_flat, linb1)

    return out_row[0, :n].reshape(n, 1)


def _reference(x, conv_w, conv_b, lin_w, lin_b):
    """Pure-JAX f32 reference of the PyTorch forward (eval mode)."""
    y = jax.lax.conv_general_dilated(
        x, conv_w, (STRIDE, STRIDE), "VALID",
        dimension_numbers=("NCHW", "OIHW", "NCHW"))
    y = jax.nn.relu(y + conv_b[None, :, None, None])
    y = y.reshape(y.shape[0], -1)
    return jax.nn.sigmoid(y @ lin_w.T + lin_b)


if __name__ == "__main__":
    # Small config consistent with the module: in_channels=1, resolution=32
    # -> conv output spatial = 2x2 (P=4), flattened features = 16 * 4 = 64.
    batch, in_channels, resolution = 2, 1, 32
    p = ((resolution - KERNEL_SIZE) // STRIDE + 1) ** 2
    feat = OUT_CHANNELS * p

    key = jax.random.PRNGKey(0)
    kx, kcw, kcb, klw, klb = jax.random.split(key, 5)

    x = jax.random.normal(kx, (batch, in_channels, resolution, resolution),
                          dtype=jnp.float32)
    conv_w = 0.1 * jax.random.normal(
        kcw, (OUT_CHANNELS, in_channels, KERNEL_SIZE, KERNEL_SIZE), jnp.float32)
    conv_b = 0.1 * jax.random.normal(kcb, (OUT_CHANNELS,), jnp.float32)
    lin_w = 0.1 * jax.random.normal(klw, (1, feat), jnp.float32)
    lin_b = 0.1 * jax.random.normal(klb, (1,), jnp.float32)

    out = sample_model_forward(x, conv_w, conv_b, lin_w, lin_b)
    out = jax.block_until_ready(out)
    assert out.shape == (batch, 1) and out.dtype == jnp.float32

    ref = jax.block_until_ready(_reference(x, conv_w, conv_b, lin_w, lin_b))
    # bf16 MXU operands (f32 accumulation) -> intentional precision trade-off.
    assert jnp.allclose(out, ref, atol=1e-2, rtol=1e-2), (out, ref)

    print("KERNEL_OK")
</pallas_src>

<mosaic_0001>
module attributes {stable_mosaic.version = 11 : i64} {
  func.func @_fused_kernel(%arg0: i32, %arg1: memref<128x128xbf16, #tpu.memory_space<vmem>>, %arg2: memref<128x64xbf16, #tpu.memory_space<vmem>>, %arg3: memref<1x64xf32, #tpu.memory_space<vmem>>, %arg4: memref<1x64xf32, #tpu.memory_space<vmem>>, %arg5: memref<1xf32, #tpu.memory_space<smem>>, %arg6: memref<1x128xf32, #tpu.memory_space<vmem>>) attributes {dimension_semantics = [#tpu.dimension_semantics<parallel>], iteration_bounds = array<i64: 1>, scalar_prefetch = 0 : i64, scratch_operands = 0 : i64, tpu.core_type = #tpu.core_type<tc>, window_params = [{transform_indices = @transform_0, window_bounds = array<i64: 128, 128>}, {pipeline_mode = #tpu.pipeline_mode<synchronous>, transform_indices = @transform_1, window_bounds = array<i64: 128, 64>}, {pipeline_mode = #tpu.pipeline_mode<synchronous>, transform_indices = @transform_2, window_bounds = array<i64: 1, 64>}, {pipeline_mode = #tpu.pipeline_mode<synchronous>, transform_indices = @transform_3, window_bounds = array<i64: 1, 64>}, {transform_indices = @transform_4, window_bounds = array<i64: 1>}, {transform_indices = @transform_5, window_bounds = array<i64: 1, 128>}]} {
    %c0 = arith.constant 0 : index
    %c0_0 = arith.constant 0 : index
    %0 = vector.load %arg1[%c0, %c0_0] : memref<128x128xbf16, #tpu.memory_space<vmem>>, vector<128x128xbf16>
    %c0_1 = arith.constant 0 : index
    %c0_2 = arith.constant 0 : index
    %1 = vector.load %arg2[%c0_1, %c0_2] : memref<128x64xbf16, #tpu.memory_space<vmem>>, vector<128x64xbf16>
    %cst = arith.constant dense<0.000000e+00> : vector<128x64xf32>
    %2 = tpu.matmul %0, %1, %cst {dimension_numbers = #tpu.dot_dimension_numbers<[1], [0], [0], [1], [0, 0, 1, 1], [], []>} : vector<128x128xbf16>, vector<128x64xbf16>, vector<128x64xf32> -> vector<128x64xf32>
    %c0_3 = arith.constant 0 : index
    %c0_4 = arith.constant 0 : index
    %3 = vector.load %arg3[%c0_3, %c0_4] : memref<1x64xf32, #tpu.memory_space<vmem>>, vector<1x64xf32>
    %4 = vector.broadcast %3 : vector<1x64xf32> to vector<128x64xf32>
    %5 = arith.addf %2, %4 : vector<128x64xf32>
    %cst_5 = arith.constant 0.000000e+00 : f32
    %6 = vector.broadcast %cst_5 : f32 to vector<128x64xf32>
    %7 = arith.maximumf %5, %6 : vector<128x64xf32>
    %c0_6 = arith.constant 0 : index
    %c0_7 = arith.constant 0 : index
    %8 = vector.load %arg4[%c0_6, %c0_7] : memref<1x64xf32, #tpu.memory_space<vmem>>, vector<1x64xf32>
    %cst_8 = arith.constant dense<0.000000e+00> : vector<1x128xf32>
    %9 = tpu.matmul %8, %7, %cst_8 {dimension_numbers = #tpu.dot_dimension_numbers<[1], [1], [0], [0], [0, 0, 1, 0], [], []>} : vector<1x64xf32>, vector<128x64xf32>, vector<1x128xf32> -> vector<1x128xf32>
    %c0_9 = arith.constant 0 : index
    %10 = memref.load %arg5[%c0_9] : memref<1xf32, #tpu.memory_space<smem>>
    %11 = vector.broadcast %10 : f32 to vector<1x128xf32>
    %12 = arith.addf %9, %11 : vector<1x128xf32>
    %13 = arith.negf %12 : vector<1x128xf32>
    %14 = math.exp %13 : vector<1x128xf32>
    %cst_10 = arith.constant 1.000000e+00 : f32
    %15 = vector.broadcast %cst_10 : f32 to vector<1x128xf32>
    %16 = arith.addf %15, %14 : vector<1x128xf32>
    %17 = arith.divf %15, %16 : vector<1x128xf32>
    %c0_11 = arith.constant 0 : index
    %c0_12 = arith.constant 0 : index
    %18 = vector.load %arg6[%c0_11, %c0_12] : memref<1x128xf32, #tpu.memory_space<vmem>>, vector<1x128xf32>
    tpu.vector_store %arg6[%c0_11, %c0_12], %17 {strides = array<i32>} : memref<1x128xf32, #tpu.memory_space<vmem>>, vector<1x128xf32>,
    return
  }
  func.func @transform_0(%arg0: i32) -> (i32, i32) {
    %c0_i32 = arith.constant 0 : i32
    %c0_i32_0 = arith.constant 0 : i32
    return %arg0, %c0_i32 : i32, i32
  }
  func.func @transform_1(%arg0: i32) -> (i32, i32) {
    %c0_i32 = arith.constant 0 : i32
    %c0_i32_0 = arith.constant 0 : i32
    %c0_i32_1 = arith.constant 0 : i32
    return %c0_i32, %c0_i32_0 : i32, i32
  }
  func.func @transform_2(%arg0: i32) -> (i32, i32) {
    %c0_i32 = arith.constant 0 : i32
    %c0_i32_0 = arith.constant 0 : i32
    %c0_i32_1 = arith.constant 0 : i32
    return %c0_i32, %c0_i32_0 : i32, i32
  }
  func.func @transform_3(%arg0: i32) -> (i32, i32) {
    %c0_i32 = arith.constant 0 : i32
    %c0_i32_0 = arith.constant 0 : i32
    %c0_i32_1 = arith.constant 0 : i32
    return %c0_i32, %c0_i32_0 : i32, i32
  }
  func.func @transform_4(%arg0: i32) -> i32 {
    %c0_i32 = arith.constant 0 : i32
    %c0_i32_0 = arith.constant 0 : i32
    return %c0_i32 : i32
  }
  func.func @transform_5(%arg0: i32) -> (i32, i32) {
    %c0_i32 = arith.constant 0 : i32
    %c0_i32_0 = arith.constant 0 : i32
    return %c0_i32, %arg0 : i32, i32
  }
}

</mosaic_0001>

<bundles_post_ra>
// kernel: tile.8
= control target key start
LH: loop header
LB: loop body
LE: loop exit
PB: predicated region body
PF: predicated region fallthrough
CT: control target
= control target key end

     0   :  { %s22_s0 = inlined_call_operand.vmem [shape: f32[16], index: 0, kind: input, shape index: {}]   ;;  %s23_s1 = inlined_call_operand.vmem [shape: f32[4,16], index: 1, kind: output, shape index: {}]  }
   0x1   :  { %v4_v0 = vld [vmem:[%s22_s0] ss:$0 sm:$0xff] }
   0x2   :  { %5 = vst [vmem:[%s23_s1] sm:$0xf] %v4_v0 }

// kernel: sample_model_forward.1
= control target key start
LH: loop header
LB: loop body
LE: loop exit
PB: predicated region body
PF: predicated region fallthrough
CT: control target
= control target key end

     0   :  { %v596_v16 = vmov 0.0|0.0   ;;  %vm597_vm0 = vmmov 0   ;;  %v598_v17 = vmov 0.0   ;;  %vm273_vm1 = vcmask 523264   ;;  %s720_s1 = inlined_call_operand.vmem [shape: bf16[128,64], index: 1, kind: input, shape index: {}]   ;;  %s721_s0 = inlined_call_operand.vmem [shape: bf16[128,128], index: 0, kind: input, shape index: {}]   ;;  %s722_s2 = inlined_call_operand.vmem [shape: f32[1,64], index: 2, kind: input, shape index: {}]   ;;  %s723_s3 = inlined_call_operand.vmem [shape: f32[1,64], index: 3, kind: input, shape index: {}]   ;;  %s724_s4 = inlined_call_operand.<no memory space> [shape: f32[1], index: 4, kind: input, shape index: {}]   ;;  %s725_s5 = inlined_call_operand.vmem [shape: f32[1,128], index: 5, kind: output, shape index: {}]  }
   0x1   :  { %v576_v0 = vld [vmem:[%s720_s1] sm:$0xff]   ;;  %v577_v1 = vld [vmem:[%s720_s1 + $0x8] sm:$0xff]   ;;  %v578_v2 = vld [vmem:[%s720_s1 + $0x10] sm:$0xff]   ;;  %541 = vmatprep.subr.bf16.mxu1 %v596_v16  ;;  %538 = vmatprep.mubr.msk.f32.mxu1 %vm597_vm0, %v598_v17 }
   0x2   :  { %474 = vmatprep.subr.bf16.mxu0 %v576_v0  ;;  %v579_v3 = vld [vmem:[%s720_s1 + $0x18] sm:$0xff]   ;;  %v584_v4 = vld [vmem:[%s721_s0] sm:$0xff]   ;;  %v581_v6 = vld [vmem:[%s720_s1 + $0x28] sm:$0xff]  }
   0x3   :  { %475 = vmatpush3.bf16.msra.mxu0 %v576_v0  ;;  %490 = vmatprep.mubr.bf16.mxu0 %v584_v4  ;;  %v580_v5 = vld [vmem:[%s720_s1 + $0x20] sm:$0xff]   ;;  %v582_v7 = vld [vmem:[%s720_s1 + $0x30] sm:$0xff]   ;;  %v583_v8 = vld [vmem:[%s720_s1 + $0x38] sm:$0xff]  }
   0x4   :  { %476 = vmatprep.subr.bf16.mxu0 %v577_v1  ;;  %v585_v9 = vld [vmem:[%s721_s0 + $0x8] sm:$0xff]   ;;  %v586_v10 = vld [vmem:[%s721_s0 + $0x10] sm:$0xff]   ;;  %v587_v11 = vld [vmem:[%s721_s0 + $0x18] sm:$0xff]  }
   0x5   :  { %v588_v12 = vld [vmem:[%s721_s0 + $0x20] sm:$0xff]   ;;  %v589_v13 = vld [vmem:[%s721_s0 + $0x28] sm:$0xff]   ;;  %v590_v14 = vld [vmem:[%s721_s0 + $0x30] sm:$0xff]  }
   0x6   :  { %v591_v15 = vld [vmem:[%s721_s0 + $0x38] sm:$0xff]   ;;  %v406_v18 = vld [vmem:[%s722_s2] ss:$0 sm:$0xff]  ;;  %vm683_vm2 = vmpackc.low %vm273_vm1, %vm273_vm1 }
   0x7   :  { %477 = vmatpush3.bf16.msra.mxu0 %v577_v1 }
   0x8   :  { %478 = vmatprep.subr.bf16.mxu0 %v578_v2 }
   0xb   :  { %479 = vmatpush3.bf16.msra.mxu0 %v578_v2 }
   0xc   :  { %480 = vmatprep.subr.bf16.mxu0 %v579_v3 }
   0xf   :  { %481 = vmatpush3.bf16.msra.mxu0 %v579_v3 }
  0x10   :  { %482 = vmatprep.subr.bf16.mxu0 %v580_v5 }
  0x13   :  { %483 = vmatpush3.bf16.msra.mxu0 %v580_v5 }
  0x14   :  { %484 = vmatprep.subr.bf16.mxu0 %v581_v6 }
  0x17   :  { %485 = vmatpush3.bf16.msra.mxu0 %v581_v6 }
  0x18   :  { %486 = vmatprep.subr.bf16.mxu0 %v582_v7 }
  0x1b   :  { %487 = vmatpush3.bf16.msra.mxu0 %v582_v7 }
  0x1c   :  { %488 = vmatprep.subr.bf16.mxu0 %v583_v8 }
  0x1f   :  { %489 = vmatpush3.bf16.msra.mxu0 %v583_v8 }
  0x22   :  { %491 = vmatmul.mubr.bf16.vlgmr.msra.gmra.mrb[0].mxu0 %v585_v9 }
  0x23   :  { %494 = vmatprep.mubr.bf16.mxu0 %v586_v10 }
  0x2a   :  { %495 = vmatmul.mubr.bf16.gmra.mrb[4].mxu0 %v587_v11 }
  0x2b   :  { %498 = vmatprep.mubr.bf16.mxu0 %v588_v12  ;;  %v270_v12 = vld [vmem:[%s723_s3] sm:$0x1] }
  0x32   :  { %499 = vmatmul.mubr.bf16.gmra.mrb[8].mxu0 %v589_v13  ;;  %v272_v13 = vstv %s724_s4 }
  0x33   :  { %502 = vmatprep.mubr.bf16.mxu0 %v590_v14 }
  0x3a   :  { %503 = vmatmul.mubr.bf16.gmra.mrb[12].mxu0 %v591_v15 }
  0xf5   :  { %v492_v19 = vpop.f32.mrb[0].mxu0 }
  0xf6   :  { %v200_v20 = vadd.f32 %v492_v19, %v406_v18  ;;  %v191_v21 = vpop.f32.mrb[1].mxu0 }
  0xf7   :  { %v192_v22 = vadd.f32 %v406_v18, %v191_v21  ;;  %v493_v23 = vpop.f32.mrb[2].mxu0 }
  0xf8   :  { %v203_v24 = vadd.f32 %v493_v23, %v406_v18  ;;  %v194_v25 = vpop.f32.mrb[3].mxu0  ;;  %v256_v27 = vmax.f32 %v200_v20, 0.0 }
  0xf9   :  { %v195_v26 = vadd.f32 %v406_v18, %v194_v25  ;;  %v254_v29 = vmax.f32 %v192_v22, 0.0 }
  0xfa   :  { %v257_v28 = vmax.f32 %v203_v24, 0.0 }
  0xfb   :  { %v255_v30 = vmax.f32 %v195_v26, 0.0 }
  0xfc   :  { %v546_v31 = vpack.c.bf16 %v257_v28, %v256_v27 }
  0xfd   :  { %v542_v33 = vpack.c.bf16 %v255_v30, %v254_v29  ;;  %v496_v34 = vpop.f32.mrb[4].mxu0 }
  0xfe   :  { %v216_v35 = vadd.f32 %v496_v34, %v406_v18  ;;  %v207_v36 = vpop.f32.mrb[5].mxu0 }
  0xff   :  { %544 = vmatpush3.bf16.xpose.msk.msra.mxu1 %vm683_vm2, %v542_v33  ;;  %v208_v37 = vadd.f32 %v406_v18, %v207_v36  ;;  %v497_v38 = vpop.f32.mrb[6].mxu0 }
 0x100   :  { %v260_v39 = vmax.f32 %v216_v35, 0.0  ;;  %v219_v40 = vadd.f32 %v497_v38, %v406_v18  ;;  %v210_v41 = vpop.f32.mrb[7].mxu0  ;;  %545 = vmatprep.subr.bf16.mxu1 %v596_v16 }
 0x101   :  { %v258_v42 = vmax.f32 %v208_v37, 0.0  ;;  %v211_v43 = vadd.f32 %v406_v18, %v210_v41 }
 0x102   :  { %v261_v44 = vmax.f32 %v219_v40, 0.0 }
 0x103   :  { %v259_v45 = vmax.f32 %v211_v43, 0.0 }
 0x104   :  { %v554_v46 = vpack.c.bf16 %v261_v44, %v260_v39 }
 0x105   :  { %v550_v47 = vpack.c.bf16 %v259_v45, %v258_v42  ;;  %v500_v48 = vpop.f32.mrb[8].mxu0 }
 0x106   :  { %v232_v49 = vadd.f32 %v500_v48, %v406_v18  ;;  %v223_v50 = vpop.f32.mrb[9].mxu0 }
 0x107   :  { %548 = vmatpush3.bf16.xpose.msk.msra.mxu1 %vm683_vm2, %v546_v31  ;;  %v224_v51 = vadd.f32 %v406_v18, %v223_v50  ;;  %v501_v52 = vpop.f32.mrb[10].mxu0 }
 0x108   :  { %549 = vmatprep.subr.bf16.mxu1 %v596_v16  ;;  %v264_v53 = vmax.f32 %v232_v49, 0.0  ;;  %v235_v54 = vadd.f32 %v501_v52, %v406_v18  ;;  %v226_v55 = vpop.f32.mrb[11].mxu0 }
 0x109   :  { %v262_v56 = vmax.f32 %v224_v51, 0.0  ;;  %v227_v57 = vadd.f32 %v406_v18, %v226_v55 }
 0x10a   :  { %v265_v58 = vmax.f32 %v235_v54, 0.0 }
 0x10b   :  { %v263_v59 = vmax.f32 %v227_v57, 0.0 }
 0x10c   :  { %v562_v60 = vpack.c.bf16 %v265_v58, %v264_v53 }
 0x10d   :  { %v558_v61 = vpack.c.bf16 %v263_v59, %v262_v56  ;;  %v504_v62 = vpop.f32.mrb[12].mxu0 }
 0x10e   :  { %v248_v63 = vadd.f32 %v504_v62, %v406_v18  ;;  %v239_v0 = vpop.f32.mrb[13].mxu0 }
 0x10f   :  { %552 = vmatpush3.bf16.xpose.msk.msra.mxu1 %vm683_vm2, %v550_v47  ;;  %v240_v1 = vadd.f32 %v406_v18, %v239_v0  ;;  %v505_v2 = vpop.f32.mrb[14].mxu0 }
 0x110   :  { %553 = vmatprep.subr.bf16.mxu1 %v596_v16  ;;  %v268_v3 = vmax.f32 %v248_v63, 0.0  ;;  %v251_v4 = vadd.f32 %v505_v2, %v406_v18  ;;  %v242_v5 = vpop.f32.mrb[15].mxu0 }
 0x111   :  { %v266_v6 = vmax.f32 %v240_v1, 0.0  ;;  %v243_v7 = vadd.f32 %v406_v18, %v242_v5 }
 0x112   :  { %v269_v8 = vmax.f32 %v251_v4, 0.0 }
 0x113   :  { %v267_v9 = vmax.f32 %v243_v7, 0.0 }
 0x114   :  { %v570_v10 = vpack.c.bf16 %v269_v8, %v268_v3 }
 0x115   :  { %v566_v11 = vpack.c.bf16 %v267_v9, %v266_v6 }
 0x117   :  { %556 = vmatpush3.bf16.xpose.msk.msra.mxu1 %vm683_vm2, %v554_v46 }
 0x118   :  { %557 = vmatprep.subr.bf16.mxu1 %v596_v16 }
 0x11f   :  { %560 = vmatpush3.bf16.xpose.msk.msra.mxu1 %vm683_vm2, %v558_v61 }
 0x120   :  { %561 = vmatprep.subr.bf16.mxu1 %v596_v16 }
 0x127   :  { %564 = vmatpush3.bf16.xpose.msk.msra.mxu1 %vm683_vm2, %v562_v60 }
 0x128   :  { %565 = vmatprep.subr.bf16.mxu1 %v596_v16 }
 0x12f   :  { %568 = vmatpush3.bf16.xpose.msk.msra.mxu1 %vm683_vm2, %v566_v11 }
 0x130   :  { %569 = vmatprep.subr.bf16.mxu1 %v596_v16 }
 0x137   :  { %572 = vmatpush3.bf16.xpose.msk.msra.mxu1 %vm683_vm2, %v570_v10 }
 0x13e   :  { %539 = vmatmul.mubr.msk.f32.vlgmr.msra.gmra.mrb[0].mxu1 %vm273_vm1, %v270_v12 }
 0x211   :  { %v391_v14 = vpop.f32.mrb[0].mxu1 }
 0x212   :  { %v392_v15 = vadd.f32 %v391_v14, %v272_v13  ;;  %v540_v17 = vpop.f32.mrb[1].mxu1 }
 0x214   :  { %v440_v18 = vmul.f32 -1.442695, %v392_v15 }
 0x216   :  { %592 = vpow2.f32 %v440_v18 }
 0x220   :  { %v593_v19 = vpop.eup %592 }
 0x221   :  { %v398_v16 = vadd.f32 1.0, %v593_v19 }
 0x223   :  { %594 = vrcp.f32 %v398_v16 }
 0x22d   :  { %v595_v20 = vpop.eup %594 }
 0x22e   :  { %401 = vst [vmem:[%s725_s5] sm:$0x1] %v595_v20 }

</bundles_post_ra>
